<compile_context>
chip_gen: v6e
topology: v6e:2x2x1
jax: 0.10.0
libtpu: 0.0.40
codegen_flags: <defaults>
</compile_context>

<pallas_src>
import jax
import jax.numpy as jnp
from jax.experimental import pallas as pl
from jax.experimental.pallas import tpu as pltpu

LANE = 128     # lane width; hidden (64) zero-padded here so h is lane-dense
OUT_PAD = 8    # output padded only to 8 lanes (== full array last dim -> legal)


def _round_up(n: int, m: int) -> int:
    return -(-n // m) * m


def _mlp_kernel(x_ref, w1_ref, b1_ref, w2_ref, b2_ref, o_ref):
    # bf16 cast of the streamed x tile: VPU work fully hidden under the DMA.
    xb = x_ref[...].astype(jnp.bfloat16)
    # fc1: bf16 MXU operands, fp32 accumulation.
    h = jnp.dot(xb, w1_ref[...], preferred_element_type=jnp.float32)
    # fp32 epilogue (bias + ReLU): fast path on v5e, free on v6e/v7x.
    h = jnp.maximum(h + b1_ref[...], 0.0)
    # fc2 onto the narrow (128, 8) padded weights -> (tb, 8) output block.
    y = jnp.dot(h.astype(jnp.bfloat16), w2_ref[...],
                preferred_element_type=jnp.float32)
    o_ref[...] = (y + b2_ref[...]).astype(o_ref.dtype)


def fast_structure_net(x, w1, b1, w2, b2, *, block_batch=8192):
    """FastStructureNet forward: relu(x @ w1 + b1) @ w2 + b2.

    x:  [B, F] float; w1: [F, 64]; b1: [1, 64] or [64];
    w2: [64, 3]; b2: [1, 3] or [3].  Returns [B, 3] float32.
    """
    B, F = x.shape
    hidden = w1.shape[1]
    out_dim = w2.shape[1]
    assert out_dim <= OUT_PAD

    # ---- one-time host-side packing / lane padding of parameters ----------
    w1p = jnp.zeros((F, LANE), jnp.bfloat16).at[:, :hidden].set(
        w1.astype(jnp.bfloat16))
    w2p = jnp.zeros((LANE, OUT_PAD), jnp.bfloat16).at[:hidden, :out_dim].set(
        w2.astype(jnp.bfloat16))
    b1p = jnp.zeros((1, LANE), jnp.float32).at[0, :hidden].set(
        b1.reshape(-1).astype(jnp.float32))
    b2p = jnp.zeros((1, OUT_PAD), jnp.float32).at[0, :out_dim].set(
        b2.reshape(-1).astype(jnp.float32))

    # ---- batch tile --------------------------------------------------------
    itemsize = x.dtype.itemsize
    bytes_per_row = F * itemsize + OUT_PAD * 4
    vmem_budget = 12 << 20  # headroom under v5e's 16 MiB scoped-VMEM default
    tb_cap = max(8, (vmem_budget // (2 * bytes_per_row)) // 8 * 8)
    tb = max(8, (min(block_batch, tb_cap) // 8) * 8)
    # Keep >=2 grid steps when B allows so v7x's two TensorCores both get work.
    tb = min(tb, max(8, _round_up(pl.cdiv(B, 2), 8)))
    grid = (pl.cdiv(B, tb),)  # ragged tail handled by edge-block masking

    cost = pl.CostEstimate(
        flops=2 * B * (F * hidden + hidden * out_dim),
        transcendentals=0,
        bytes_accessed=(B * F * itemsize + B * OUT_PAD * 4
                        + w1p.size * 2 + w2p.size * 2
                        + (b1p.size + b2p.size) * 4),
    )

    out = pl.pallas_call(
        _mlp_kernel,
        out_shape=jax.ShapeDtypeStruct((B, OUT_PAD), jnp.float32),
        grid=grid,
        in_specs=[
            pl.BlockSpec((tb, F), lambda i: (i, 0)),          # x: streamed per tile (fp32)
            pl.BlockSpec((F, LANE), lambda i: (0, 0)),        # w1: resident
            pl.BlockSpec((1, LANE), lambda i: (0, 0)),        # b1: resident
            pl.BlockSpec((LANE, OUT_PAD), lambda i: (0, 0)),  # w2: resident (narrow)
            pl.BlockSpec((1, OUT_PAD), lambda i: (0, 0)),     # b2: resident
        ],
        out_specs=pl.BlockSpec((tb, OUT_PAD), lambda i: (i, 0)),
        compiler_params=pltpu.CompilerParams(
            dimension_semantics=("parallel",)),  # shards batch over v7x's 2 TCs
        cost_estimate=cost,
    )(x, w1p, b1p, w2p, b2p)

    # Narrow (B, 8) -> (B, 3): 32 B/row, negligible vs the old 512 B/row slab.
    return out[:, :out_dim]


def reference(x, w1, b1, w2, b2):
    h = jnp.maximum(x @ w1 + b1.reshape(1, -1), 0.0)
    return h @ w2 + b2.reshape(1, -1)


if __name__ == "__main__":
    key = jax.random.PRNGKey(0)
    k_x, k_w1, k_b1, k_w2, k_b2, k_x2 = jax.random.split(key, 6)

    batch = 8
    in_features = 32   # stands in for X_train.shape[1]
    hidden = 64
    out_dim = 3

    x = jax.random.normal(k_x, (batch, in_features), dtype=jnp.float32)
    # Deterministic synthetic parameters (PyTorch-style uniform init ranges).
    lim1 = 1.0 / jnp.sqrt(in_features)
    lim2 = 1.0 / jnp.sqrt(hidden)
    w1 = jax.random.uniform(k_w1, (in_features, hidden), jnp.float32, -lim1, lim1)
    b1 = jax.random.uniform(k_b1, (1, hidden), jnp.float32, -lim1, lim1)
    w2 = jax.random.uniform(k_w2, (hidden, out_dim), jnp.float32, -lim2, lim2)
    b2 = jax.random.uniform(k_b2, (1, out_dim), jnp.float32, -lim2, lim2)

    # --- small single-tile case -------------------------------------------
    out = jax.block_until_ready(fast_structure_net(x, w1, b1, w2, b2))
    ref = reference(x, w1, b1, w2, b2)
    assert out.shape == (batch, out_dim)
    # bf16 MXU operands -> loosened tolerance vs the fp32 reference.
    assert jnp.allclose(out, ref, atol=2e-2, rtol=2e-2), "mismatch vs reference"

    # --- multi-tile gridded case (batch not a multiple of the tile) --------
    batch2 = 40
    x2 = jax.random.normal(k_x2, (batch2, in_features), dtype=jnp.float32)
    out2 = jax.block_until_ready(
        fast_structure_net(x2, w1, b1, w2, b2, block_batch=16))
    ref2 = reference(x2, w1, b1, w2, b2)
    assert out2.shape == (batch2, out_dim)
    assert jnp.allclose(out2, ref2, atol=2e-2, rtol=2e-2), "mismatch (gridded)"

    print("KERNEL_OK")
</pallas_src>

<mosaic_0001>
module attributes {stable_mosaic.version = 11 : i64} {
  func.func @_mlp_kernel(%arg0: i32, %arg1: memref<8x32xf32, #tpu.memory_space<vmem>>, %arg2: memref<32x128xbf16, #tpu.memory_space<vmem>>, %arg3: memref<1x128xf32, #tpu.memory_space<vmem>>, %arg4: memref<128x8xbf16, #tpu.memory_space<vmem>>, %arg5: memref<1x8xf32, #tpu.memory_space<vmem>>, %arg6: memref<8x8xf32, #tpu.memory_space<vmem>>) attributes {dimension_semantics = [#tpu.dimension_semantics<parallel>], iteration_bounds = array<i64: 1>, scalar_prefetch = 0 : i64, scratch_operands = 0 : i64, tpu.core_type = #tpu.core_type<tc>, window_params = [{transform_indices = @transform_0, window_bounds = array<i64: 8, 32>}, {pipeline_mode = #tpu.pipeline_mode<synchronous>, transform_indices = @transform_1, window_bounds = array<i64: 32, 128>}, {pipeline_mode = #tpu.pipeline_mode<synchronous>, transform_indices = @transform_2, window_bounds = array<i64: 1, 128>}, {pipeline_mode = #tpu.pipeline_mode<synchronous>, transform_indices = @transform_3, window_bounds = array<i64: 128, 8>}, {pipeline_mode = #tpu.pipeline_mode<synchronous>, transform_indices = @transform_4, window_bounds = array<i64: 1, 8>}, {transform_indices = @transform_5, window_bounds = array<i64: 8, 8>}]} {
    %c0 = arith.constant 0 : index
    %c0_0 = arith.constant 0 : index
    %0 = vector.load %arg1[%c0, %c0_0] : memref<8x32xf32, #tpu.memory_space<vmem>>, vector<8x32xf32>
    %1 = arith.truncf %0 : vector<8x32xf32> to vector<8x32xbf16>
    %c0_1 = arith.constant 0 : index
    %c0_2 = arith.constant 0 : index
    %2 = vector.load %arg2[%c0_1, %c0_2] : memref<32x128xbf16, #tpu.memory_space<vmem>>, vector<32x128xbf16>
    %cst = arith.constant dense<0.000000e+00> : vector<8x128xf32>
    %3 = tpu.matmul %1, %2, %cst {dimension_numbers = #tpu.dot_dimension_numbers<[1], [0], [0], [1], [0, 0, 1, 1], [], []>} : vector<8x32xbf16>, vector<32x128xbf16>, vector<8x128xf32> -> vector<8x128xf32>
    %c0_3 = arith.constant 0 : index
    %c0_4 = arith.constant 0 : index
    %4 = vector.load %arg3[%c0_3, %c0_4] : memref<1x128xf32, #tpu.memory_space<vmem>>, vector<1x128xf32>
    %5 = vector.broadcast %4 : vector<1x128xf32> to vector<8x128xf32>
    %6 = arith.addf %3, %5 : vector<8x128xf32>
    %cst_5 = arith.constant 0.000000e+00 : f32
    %7 = vector.broadcast %cst_5 : f32 to vector<8x128xf32>
    %8 = arith.maximumf %6, %7 : vector<8x128xf32>
    %9 = arith.truncf %8 : vector<8x128xf32> to vector<8x128xbf16>
    %c0_6 = arith.constant 0 : index
    %c0_7 = arith.constant 0 : index
    %10 = vector.load %arg4[%c0_6, %c0_7] : memref<128x8xbf16, #tpu.memory_space<vmem>>, vector<128x8xbf16>
    %cst_8 = arith.constant dense<0.000000e+00> : vector<8x8xf32>
    %11 = tpu.matmul %9, %10, %cst_8 {dimension_numbers = #tpu.dot_dimension_numbers<[1], [0], [0], [1], [0, 0, 1, 1], [], []>} : vector<8x128xbf16>, vector<128x8xbf16>, vector<8x8xf32> -> vector<8x8xf32>
    %c0_9 = arith.constant 0 : index
    %c0_10 = arith.constant 0 : index
    %12 = vector.load %arg5[%c0_9, %c0_10] : memref<1x8xf32, #tpu.memory_space<vmem>>, vector<1x8xf32>
    %13 = vector.broadcast %12 : vector<1x8xf32> to vector<8x8xf32>
    %14 = arith.addf %11, %13 : vector<8x8xf32>
    %c0_11 = arith.constant 0 : index
    %c0_12 = arith.constant 0 : index
    %15 = vector.load %arg6[%c0_11, %c0_12] : memref<8x8xf32, #tpu.memory_space<vmem>>, vector<8x8xf32>
    tpu.vector_store %arg6[%c0_11, %c0_12], %14 {strides = array<i32>} : memref<8x8xf32, #tpu.memory_space<vmem>>, vector<8x8xf32>,
    return
  }
  func.func @transform_0(%arg0: i32) -> (i32, i32) {
    %c0_i32 = arith.constant 0 : i32
    %c0_i32_0 = arith.constant 0 : i32
    return %arg0, %c0_i32 : i32, i32
  }
  func.func @transform_1(%arg0: i32) -> (i32, i32) {
    %c0_i32 = arith.constant 0 : i32
    %c0_i32_0 = arith.constant 0 : i32
    %c0_i32_1 = arith.constant 0 : i32
    return %c0_i32, %c0_i32_0 : i32, i32
  }
  func.func @transform_2(%arg0: i32) -> (i32, i32) {
    %c0_i32 = arith.constant 0 : i32
    %c0_i32_0 = arith.constant 0 : i32
    %c0_i32_1 = arith.constant 0 : i32
    return %c0_i32, %c0_i32_0 : i32, i32
  }
  func.func @transform_3(%arg0: i32) -> (i32, i32) {
    %c0_i32 = arith.constant 0 : i32
    %c0_i32_0 = arith.constant 0 : i32
    %c0_i32_1 = arith.constant 0 : i32
    return %c0_i32, %c0_i32_0 : i32, i32
  }
  func.func @transform_4(%arg0: i32) -> (i32, i32) {
    %c0_i32 = arith.constant 0 : i32
    %c0_i32_0 = arith.constant 0 : i32
    %c0_i32_1 = arith.constant 0 : i32
    return %c0_i32, %c0_i32_0 : i32, i32
  }
  func.func @transform_5(%arg0: i32) -> (i32, i32) {
    %c0_i32 = arith.constant 0 : i32
    %c0_i32_0 = arith.constant 0 : i32
    return %arg0, %c0_i32 : i32, i32
  }
}

</mosaic_0001>

<bundles_post_ra>
// kernel: tpu_custom_call.1
= control target key start
LH: loop header
LB: loop body
LE: loop exit
PB: predicated region body
PF: predicated region fallthrough
CT: control target
= control target key end

     0   :  { %v308_v1 = vmov 0.0   ;;  %vm309_vm0 = vmmov 0   ;;  %vm47_vm1 = vcmask 261120   ;;  %s383_s0 = inlined_call_operand.vmem [shape: f32[8,32], index: 0, kind: input, shape index: {}]   ;;  %s384_s1 = inlined_call_operand.vmem [shape: bf16[32,128], index: 1, kind: input, shape index: {}]   ;;  %s385_s2 = inlined_call_operand.vmem [shape: f32[1,128], index: 2, kind: input, shape index: {}]   ;;  %s386_s3 = inlined_call_operand.vmem [shape: bf16[128,8], index: 3, kind: input, shape index: {}]   ;;  %s387_s4 = inlined_call_operand.vmem [shape: f32[1,8], index: 4, kind: input, shape index: {}]   ;;  %s388_s5 = inlined_call_operand.hbm [shape: f32[8,8], index: 5, kind: output, shape index: {}]  }
   0x1   :  { %v276_v0 = vld [vmem:[%s384_s1 + $0x8] sm:$0xff]   ;;  %245 = vmatprep.subr.bf16.mxu0 %v308_v1  ;;  %v277_v2 = vld [vmem:[%s384_s1] sm:$0xff]   ;;  %253 = vmatprep.subr.bf16.mxu1 %v308_v1  ;;  %v278_v4 = vld [vmem:[%s386_s3 + $0x38] sm:$0xff]  }
   0x2   :  { %246 = vmatpush3.bf16.msra.mxu0 %v276_v0  ;;  %249 = vmatprep.mubr.msk.bf16.mxu0 %vm309_vm0, %v308_v1  ;;  %v22_v3 = vld [vmem:[%s383_s0] sm:$0xff]  ;;  %v279_v6 = vld [vmem:[%s386_s3 + $0x30] sm:$0xff]   ;;  %v280_v7 = vld [vmem:[%s386_s3 + $0x28] sm:$0xff]  }
   0x3   :  { %247 = vmatprep.subr.bf16.mxu0 %v308_v1  ;;  %269 = vmatprep.mubr.msk.bf16.mxu1 %vm309_vm0, %v308_v1  ;;  %v23_v5 = vpack.c.bf16 %v22_v3, %v22_v3 }
   0x4   :  { %254 = vmatpush3.bf16.msra.mxu1 %v278_v4 }
   0x5   :  { %255 = vmatprep.subr.bf16.mxu1 %v308_v1 }
   0x6   :  { %248 = vmatpush3.bf16.msra.mxu0 %v277_v2 }
   0x8   :  { %256 = vmatpush3.bf16.msra.mxu1 %v279_v6 }
   0x9   :  { %250 = vmatmul.mubr.msk.bf16.vlgmr.msra.gmra.mxu0 %vm47_vm1, %v23_v5  ;;  %257 = vmatprep.subr.bf16.mxu1 %v308_v1 }
   0xa   :  { %10 = vsyncpa [#allocation3], 0  ;;  %v281_v8 = vld [vmem:[%s386_s3 + $0x20] sm:$0xff]   ;;  %v282_v9 = vld [vmem:[%s386_s3 + $0x18] sm:$0xff]   ;;  %s310_s17 = smov [#allocation2]   ;;  %vm204_vm2 = vcmask 64512  }
   0xb   :  { %v283_v10 = vld [vmem:[%s386_s3 + $0x10] sm:$0xff]   ;;  %v284_v11 = vld [vmem:[%s386_s3 + $0x8] sm:$0xff]   ;;  %v285_v12 = vld [vmem:[%s386_s3] sm:$0xff]   ;;  %s212_s18 = sshll.u32 %s310_s17, 4  ;;  %s213_s18 = int_to_ptr.vmem [resolvable:$true] %s212_s18 }
   0xc   :  { %258 = vmatpush3.bf16.msra.mxu1 %v280_v7  ;;  %v220_v13 = vld [vmem:[%s385_s2] ss:$0 sm:$0xff]  ;;  %s286_s2 = scalar_lea.vmem %s213_s18, 128  ;;  %p291_p1 = scmp.lt.s32.totalorder %s213_s18, %s213_s18 }
   0xd   :  { %259 = vmatprep.subr.bf16.mxu1 %v308_v1  ;;  %v224_v21 = vld [vmem:[%s387_s4] ss:$0 sm:$0xff]  ;;  %p287_p0 = scmp.ne.s32.totalorder %s213_s18, %s286_s2  ;;  %p292_p2 = scmp.lt.s32.totalorder %s286_s2, %s286_s2 }
   0xf   :  { %p293_p3 = por %p292_p2, %p291_p1 }
  0x10   :  { %260 = vmatpush3.bf16.msra.mxu1 %v281_v8 }
  0x11   :  { %261 = vmatprep.subr.bf16.mxu1 %v308_v1  ;;  %p294_p4 = pnand %p293_p3, %p287_p0 }
  0x14   :  { %262 = vmatpush3.bf16.msra.mxu1 %v282_v9 }
  0x15   :  { %263 = vmatprep.subr.bf16.mxu1 %v308_v1 }
  0x18   :  { %264 = vmatpush3.bf16.msra.mxu1 %v283_v10 }
  0x19   :  { %265 = vmatprep.subr.bf16.mxu1 %v308_v1 }
  0x1c   :  { %266 = vmatpush3.bf16.msra.mxu1 %v284_v11 }
  0x1d   :  { %267 = vmatprep.subr.bf16.mxu1 %v308_v1 }
  0x20   :  { %268 = vmatpush3.bf16.msra.mxu1 %v285_v12 }
  0xc9   :  { %v85_v14 = vpop.f32.mrf.mxu0 }
  0xca   :  { %v86_v15 = vadd.f32 %v220_v13, %v85_v14 }
  0xcb   :  { %v251_v16 = vpop.f32.mrf.mxu0 }
  0xcc   :  { %v91_v17 = vmax.f32 %v86_v15, 0.0 }
  0xcd   :  { %v88_v18 = vpop.f32.mrf.mxu0 }
  0xce   :  { %v92_v19 = vpack.c.bf16 %v91_v17, %v91_v17 }
  0xcf   :  { %v252_v20 = vpop.f32.mrf.mxu0 }
  0xd0   :  { %270 = vmatmul.mubr.bf16.vlgmr.msra.gmra.mxu1 %v92_v19 }
 0x190   :  { %v198_v22 = vpop.f32.mrf.mxu1 }
 0x191   :  { %v199_v23 = vadd.f32 %v224_v21, %v198_v22 }
 0x192   :  { %v271_v24 = vpop.f32.mrf.mxu1 }
 0x193   :  { %205 = vst.msk [vmem:[#allocation2] sm:$0xff] %vm204_vm2, %v199_v23 }
 0x194   :  { %v201_v25 = vpop.f32.mrf.mxu1 }
 0x195   :  { %297 = shalt.err (!%p294_p4)
}
 0x196   :  { %215 = dma.vmem_to_hbm [thread:$0]  %s213_s18, 128, %s388_s5, [#allocation3]   ;;  %v272_v26 = vpop.f32.mrf.mxu1 }
 0x197   :  { %306 = dma.done.wait [#allocation3], 128  }
 0x198   :  { %307 = vsyncadd [#allocation3], 4294967168 }
 0x199   :  { %219 = vsyncpa [#allocation3], 1 }

</bundles_post_ra>
